<compile_context>
chip_gen: v5e
topology: v5e:2x2
jax: 0.10.0
libtpu: 0.0.40
codegen_flags: <defaults>
</compile_context>

<pallas_src>
import functools

import jax
import jax.numpy as jnp
from jax.experimental import pallas as pl
from jax.experimental.pallas import tpu as pltpu

BM_MAX = 512                      # output-row tile for matmuls (multiple of 8)
BN_MAX = 256                      # output-col tile fallback when weight won't fit VMEM
WEIGHT_FULLN_BYTES = 4 * 1024 * 1024   # full-N resident weight threshold (bf16 bytes)
ROW_TILE_MAX = 512                # max wide rows per 3x3-conv grid step
VMEM_LIMIT_BYTES = 48 * 1024 * 1024
ACT_DTYPE = jnp.bfloat16
BN_EPS = 1e-5


# ----------------------------------------------------------------------------
# Pallas kernels
# ----------------------------------------------------------------------------
def _matmul_fused_kernel(a_ref, b_ref, t_ref, *rest, relu, has_residual):
    # y = [relu]( A @ B + shift [+ residual] ); BN scale already folded into B.
    if has_residual:
        r_ref, o_ref = rest
    else:
        (o_ref,) = rest
    y = jnp.dot(a_ref[...], b_ref[...], preferred_element_type=jnp.float32)
    y = y + t_ref[...].astype(jnp.float32)
    if has_residual:
        y = y + r_ref[...].astype(jnp.float32)
    if relu:
        y = jnp.maximum(y, 0.0)
    o_ref[...] = y.astype(o_ref.dtype)


def _conv3x3_kernel(x_ref, w_ref, t_ref, o_ref, *, taps, th, ws, wo, nr):
    # x_ref: (1, P, L, C) bf16 phase-split padded activation (per image, flattened HW)
    # w_ref: (9, C, bn)   bf16 per-tap weights (BN scale folded in)
    # t_ref: (1, bn)      f32 shift
    # o_ref: (1, th, Wo, bn) bf16 compact output tile (th output rows)
    rows = th * ws
    if nr == 1:
        base = 0                                   # static slices when no row tiling
    else:
        base = pl.multiple_of(pl.program_id(2) * rows, 8)   # ws is a multiple of 8
    acc = None
    for t, (ph, s) in enumerate(taps):
        a = x_ref[0, ph, pl.ds(base + s, rows), :]           # (rows, C)
        p = jnp.dot(a, w_ref[t], preferred_element_type=jnp.float32)
        acc = p if acc is None else acc + p                  # traced (MXU-chained) acc
    y = jnp.maximum(acc + t_ref[...].astype(jnp.float32), 0.0)
    bn = y.shape[-1]
    # in-kernel compaction: drop the junk pad columns, single lane-dense store
    y = y.reshape(th, ws, bn)[:, :wo, :]
    o_ref[0] = y.astype(o_ref.dtype)


def _maxpool_kernel(x_ref, o_ref, *, taps, ho, wo):
    # elementwise max over 9 statically-shifted phase views (per image)
    r = None
    for (ph, oi, oj) in taps:
        v = x_ref[0, ph, oi:oi + ho, oj:oj + wo, :]
        r = v if r is None else jnp.maximum(r, v)
    o_ref[0] = r


def _avgpool_kernel(x_ref, o_ref):
    m = jnp.mean(x_ref[...].astype(jnp.float32), axis=(1, 2))   # (1, C)
    o_ref[0] = m.astype(o_ref.dtype)


# ----------------------------------------------------------------------------
# Pallas wrappers
# ----------------------------------------------------------------------------
def matmul_fused(a, b, shift, residual=None, relu=False, out_dtype=ACT_DTYPE):
    """(M,K)@(K,N) + shift [+ residual] [ReLU].  Full-K blocks, no padding copies.

    When the bf16 weight fits comfortably in VMEM, it is a single full-N block with a
    constant index_map (DMA'd once per layer) and the grid is 1-D over M tiles."""
    M, K = a.shape
    _, N = b.shape
    bm = M if M <= BM_MAX else BM_MAX
    has_residual = residual is not None
    full_n = (K * N * b.dtype.itemsize) <= WEIGHT_FULLN_BYTES

    inputs = [a, b, shift.reshape(1, N).astype(jnp.float32)]
    if full_n:
        grid = (pl.cdiv(M, bm),)
        in_specs = [
            pl.BlockSpec((bm, K), lambda i: (i, 0)),
            pl.BlockSpec((K, N), lambda i: (0, 0)),      # constant -> weight resident
            pl.BlockSpec((1, N), lambda i: (0, 0)),
        ]
        out_spec = pl.BlockSpec((bm, N), lambda i: (i, 0))
        if has_residual:
            inputs.append(residual)
            in_specs.append(pl.BlockSpec((bm, N), lambda i: (i, 0)))
        dims = ("parallel",)
    else:
        bn = N if N <= BN_MAX else BN_MAX
        grid = (pl.cdiv(M, bm), pl.cdiv(N, bn))
        in_specs = [
            pl.BlockSpec((bm, K), lambda i, j: (i, 0)),
            pl.BlockSpec((K, bn), lambda i, j: (0, j)),
            pl.BlockSpec((1, bn), lambda i, j: (0, j)),
        ]
        out_spec = pl.BlockSpec((bm, bn), lambda i, j: (i, j))
        if has_residual:
            inputs.append(residual)
            in_specs.append(pl.BlockSpec((bm, bn), lambda i, j: (i, j)))
        dims = ("parallel", "parallel")

    return pl.pallas_call(
        functools.partial(_matmul_fused_kernel, relu=relu,
                          has_residual=has_residual),
        out_shape=jax.ShapeDtypeStruct((M, N), out_dtype),
        grid=grid,
        in_specs=in_specs,
        out_specs=out_spec,
        compiler_params=pltpu.CompilerParams(
            dimension_semantics=dims,
            vmem_limit_bytes=VMEM_LIMIT_BYTES),
    )(*inputs)


def _fold_bn(bn_p, conv_bias):
    scale = bn_p["gamma"] * jax.lax.rsqrt(bn_p["var"] + BN_EPS)
    shift = (bn_p["beta"] + scale * (conv_bias - bn_p["mean"])).astype(jnp.float32)
    return scale, shift


def conv1x1_bn(x, conv_p, bn_p, stride=1, relu=True, residual=None):
    """1x1 conv + BN(eval) [+ residual] [+ ReLU]: a direct fused matmul, no im2col."""
    if stride > 1:
        # TODO(synk): the stride-2 subsample is still an XLA-side strided copy; a
        # strided in-kernel DMA / phase view would remove this HBM round trip.
        x = x[:, ::stride, ::stride, :]
    N, H, W, C = x.shape
    w, b = conv_p["w"], conv_p["b"]                  # (Cout, Cin, 1, 1)
    cout = w.shape[0]
    scale, shift = _fold_bn(bn_p, b)
    wf = (w.reshape(cout, C).T * scale[None, :]).astype(ACT_DTYPE)

    a = x.reshape(N * H * W, C)
    r = residual.reshape(N * H * W, cout) if residual is not None else None
    out = matmul_fused(a, wf, shift, residual=r, relu=relu)
    return out.reshape(N, H, W, cout)


def _round_up(v, m):
    return ((v + m - 1) // m) * m


def _pick_row_tile(ho, ws, max_rows=ROW_TILE_MAX):
    th = 1
    for cand in range(1, ho + 1):
        if ho % cand == 0 and cand * ws <= max_rows:
            th = cand
    return th


def conv3x3_bn_relu(x, conv_p, bn_p, stride):
    """3x3 conv (pad=1) + BN + ReLU.  No im2col; 9 statically-shifted matmuls over a
    phase-split padded slab, accumulated in registers, compacted in-kernel."""
    N, H, W, C = x.shape
    w, b = conv_p["w"], conv_p["b"]                  # (Cout, Cin, 3, 3)
    cout = w.shape[0]
    Ho = (H + 2 - 3) // stride + 1
    Wo = (W + 2 - 3) // stride + 1

    scale, shift = _fold_bn(bn_p, b)
    shift = shift.reshape(1, cout)
    w9 = (jnp.transpose(w, (2, 3, 1, 0)).reshape(9, C, cout)
          * scale[None, None, :]).astype(ACT_DTYPE)

    if stride == 1:
        # single "phase": padded activation, flattened rows; taps are row shifts.
        # WS (wide row width) padded to a multiple of 8 -> sublane-aligned row taps.
        WS = _round_up(Wo + 2, 8)
        HS = Ho + 3                                   # +1 slack row for the wide slice
        xp = jnp.pad(x, ((0, 0), (1, HS - 1 - H), (1, WS - 1 - W), (0, 0)))
        phases = xp[:, None]                          # (N, 1, HS, WS, C)
        taps = tuple((0, di * WS + dj) for di in range(3) for dj in range(3))
        P = 1
    else:
        # stride 2: space-to-depth phase split -> every tap is a stride-1 shift.
        # TODO(synk): the phase split is still an XLA-side pad+stack copy.
        WS = _round_up(Wo + 1, 8)
        HS = Ho + 2
        xp = jnp.pad(x, ((0, 0), (1, 2 * HS - 1 - H), (1, 2 * WS - 1 - W), (0, 0)))
        phases = jnp.stack(
            [xp[:, p:p + 2 * HS - 1:2, q:q + 2 * WS - 1:2, :]
             for p in range(2) for q in range(2)], axis=1)    # (N, 4, HS, WS, C)
        taps = tuple(((di % 2) * 2 + (dj % 2), (di // 2) * WS + (dj // 2))
                     for di in range(3) for dj in range(3))
        P = 4

    L = HS * WS
    xf = phases.reshape(N, P, L, C)                   # 1x-sized HBM array (no 9x dup)
    th = _pick_row_tile(Ho, WS)                       # output rows per grid step
    nr = Ho // th
    bn_blk = cout if cout <= BN_MAX else BN_MAX
    nj = pl.cdiv(cout, bn_blk)
    # grid order: cout tiles slowest (weight resident across batch), image, rows.
    grid = (nj, N, nr)

    out = pl.pallas_call(
        functools.partial(_conv3x3_kernel, taps=taps, th=th, ws=WS, wo=Wo, nr=nr),
        out_shape=jax.ShapeDtypeStruct((N, Ho, Wo, cout), ACT_DTYPE),
        grid=grid,
        in_specs=[
            pl.BlockSpec((1, P, L, C), lambda j, n, r: (n, 0, 0, 0)),
            pl.BlockSpec((9, C, bn_blk), lambda j, n, r: (0, 0, j)),
            pl.BlockSpec((1, bn_blk), lambda j, n, r: (0, j)),
        ],
        out_specs=pl.BlockSpec((1, th, Wo, bn_blk), lambda j, n, r: (n, r, 0, j)),
        compiler_params=pltpu.CompilerParams(
            dimension_semantics=("parallel", "parallel", "parallel"),
            vmem_limit_bytes=VMEM_LIMIT_BYTES),
    )(xf, w9, shift)
    return out


def conv7x7_stem(x, conv_p, bn_p):
    """7x7 / stride 2 / pad 3 stem.  Cin=3, so XLA-side im2col (K=147) is kept to feed
    the MXU; this is the only conv that materializes patches (cheap: 3-channel input)."""
    N, H, W, C = x.shape
    w, b = conv_p["w"], conv_p["b"]                   # (64, C, 7, 7)
    cout, _, kh, kw = w.shape
    stride, pad = 2, 3
    Ho = (H + 2 * pad - kh) // stride + 1
    Wo = (W + 2 * pad - kw) // stride + 1
    xp = jnp.pad(x, ((0, 0), (pad, pad), (pad, pad), (0, 0)))
    cols = [xp[:, i:i + (Ho - 1) * stride + 1:stride,
                  j:j + (Wo - 1) * stride + 1:stride, :]
            for i in range(kh) for j in range(kw)]
    patches = jnp.stack(cols, axis=3)                 # (N, Ho, Wo, 49, C)
    a = patches.reshape(N * Ho * Wo, kh * kw * C)

    scale, shift = _fold_bn(bn_p, b)
    wf = (jnp.transpose(w, (2, 3, 1, 0)).reshape(kh * kw * C, cout)
          * scale[None, :]).astype(ACT_DTYPE)
    out = matmul_fused(a, wf, shift, relu=True)
    return out.reshape(N, Ho, Wo, cout)


def maxpool2d_3x3s2(x):
    """3x3 / stride 2 / pad 1 max-pool: elementwise max of 9 phase-shifted views."""
    N, H, W, C = x.shape
    Ho = (H + 2 - 3) // 2 + 1
    Wo = (W + 2 - 3) // 2 + 1
    HS, WS = Ho + 1, Wo + 1
    xp = jnp.pad(x, ((0, 0), (1, 2 * HS - 1 - H), (1, 2 * WS - 1 - W), (0, 0)),
                 constant_values=-jnp.inf)
    phases = jnp.stack(
        [xp[:, p:p + 2 * HS - 1:2, q:q + 2 * WS - 1:2, :]
         for p in range(2) for q in range(2)], axis=1)        # (N, 4, HS, WS, C)
    taps = tuple(((di % 2) * 2 + (dj % 2), di // 2, dj // 2)
                 for di in range(3) for dj in range(3))
    return pl.pallas_call(
        functools.partial(_maxpool_kernel, taps=taps, ho=Ho, wo=Wo),
        out_shape=jax.ShapeDtypeStruct((N, Ho, Wo, C), x.dtype),
        grid=(N,),
        in_specs=[pl.BlockSpec((1, 4, HS, WS, C), lambda n: (n, 0, 0, 0, 0))],
        out_specs=pl.BlockSpec((1, Ho, Wo, C), lambda n: (n, 0, 0, 0)),
        compiler_params=pltpu.CompilerParams(
            dimension_semantics=("parallel",),
            vmem_limit_bytes=VMEM_LIMIT_BYTES),
    )(phases)


def global_avgpool(x):
    N, H, W, C = x.shape
    out = pl.pallas_call(
        _avgpool_kernel,
        out_shape=jax.ShapeDtypeStruct((N, 1, C), x.dtype),
        grid=(N,),
        in_specs=[pl.BlockSpec((1, H, W, C), lambda n: (n, 0, 0, 0))],
        out_specs=pl.BlockSpec((1, 1, C), lambda n: (n, 0, 0)),
        compiler_params=pltpu.CompilerParams(
            dimension_semantics=("parallel",),
            vmem_limit_bytes=VMEM_LIMIT_BYTES),
    )(x)
    return out.reshape(N, C)


# ----------------------------------------------------------------------------
# Model (bottleneck ResNet, expansion = 4)
# ----------------------------------------------------------------------------
def bottleneck_block(x, p):
    stride = p["stride"]
    out = conv1x1_bn(x, p["conv1"], p["bn1"], stride=1, relu=True)
    out = conv3x3_bn_relu(out, p["conv2"], p["bn2"], stride=stride)
    if "down_conv" in p:
        identity = conv1x1_bn(x, p["down_conv"], p["down_bn"],
                              stride=stride, relu=False)
    else:
        identity = x
    # relu(bn3(conv3(out)) + identity) fused into the matmul epilogue
    out = conv1x1_bn(out, p["conv3"], p["bn3"], stride=1, relu=True,
                     residual=identity)
    return out


def resnet_forward(params, x_nchw):
    x = jnp.transpose(x_nchw, (0, 2, 3, 1)).astype(ACT_DTYPE)    # NCHW -> NHWC bf16
    x = conv7x7_stem(x, params["conv1"], params["bn1"])
    x = maxpool2d_3x3s2(x)
    for name in ("layer1", "layer2", "layer3", "layer4"):
        for blk in params[name]:
            x = bottleneck_block(x, blk)
    x = global_avgpool(x)                                        # (N, 2048) bf16
    fc_w, fc_b = params["fc"]["w"], params["fc"]["b"]            # torch: (classes, 2048)
    logits = matmul_fused(x, fc_w.T.astype(ACT_DTYPE),
                          fc_b.astype(jnp.float32),
                          relu=False, out_dtype=jnp.float32)
    return logits


# ----------------------------------------------------------------------------
# Deterministic synthetic parameter init
# ----------------------------------------------------------------------------
class KeyGen:
    def __init__(self, seed):
        self.key = jax.random.PRNGKey(seed)

    def __call__(self):
        self.key, sub = jax.random.split(self.key)
        return sub


def init_conv(kg, cout, cin, kh, kw):
    return {
        "w": 0.05 * jax.random.normal(kg(), (cout, cin, kh, kw), jnp.float32),
        "b": 0.02 * jax.random.normal(kg(), (cout,), jnp.float32),
    }


def init_bn(kg, c):
    return {
        "gamma": 1.0 + 0.1 * jax.random.normal(kg(), (c,), jnp.float32),
        "beta": 0.05 * jax.random.normal(kg(), (c,), jnp.float32),
        "mean": 0.05 * jax.random.normal(kg(), (c,), jnp.float32),
        "var": 1.0 + 0.1 * jnp.abs(jax.random.normal(kg(), (c,), jnp.float32)),
    }


def init_block(kg, cin, mid, stride):
    p = {
        "stride": stride,
        "conv1": init_conv(kg, mid, cin, 1, 1), "bn1": init_bn(kg, mid),
        "conv2": init_conv(kg, mid, mid, 3, 3), "bn2": init_bn(kg, mid),
        "conv3": init_conv(kg, mid * 4, mid, 1, 1), "bn3": init_bn(kg, mid * 4),
    }
    if stride != 1 or cin != mid * 4:
        p["down_conv"] = init_conv(kg, mid * 4, cin, 1, 1)
        p["down_bn"] = init_bn(kg, mid * 4)
    return p


def init_resnet(seed, layers, image_channels, num_classes):
    kg = KeyGen(seed)
    params = {"conv1": init_conv(kg, 64, image_channels, 7, 7), "bn1": init_bn(kg, 64)}
    in_ch = 64
    for li, (mid, n, stride) in enumerate(zip((64, 128, 256, 512), layers, (1, 2, 2, 2)), 1):
        blocks = [init_block(kg, in_ch, mid, stride)]
        in_ch = mid * 4
        for _ in range(n - 1):
            blocks.append(init_block(kg, in_ch, mid, 1))
        params[f"layer{li}"] = blocks
    params["fc"] = {
        "w": 0.05 * jax.random.normal(kg(), (num_classes, 512 * 4), jnp.float32),
        "b": 0.02 * jax.random.normal(kg(), (num_classes,), jnp.float32),
    }
    return params


if __name__ == "__main__":
    # Small deterministic config: bottleneck layers=[1,1,1,1], image_channels=3,
    # num_classes=10, input 2x3x32x32 (NCHW, like PyTorch).
    params = init_resnet(0, [1, 1, 1, 1], image_channels=3, num_classes=10)
    x = jax.random.normal(jax.random.PRNGKey(0), (2, 3, 32, 32), jnp.float32)
    logits = resnet_forward(params, x)
    jax.block_until_ready(logits)
    assert logits.shape == (2, 10) and bool(jnp.all(jnp.isfinite(logits)))
    print("KERNEL_OK")
</pallas_src>

<mosaic_0001>
module attributes {stable_mosaic.version = 11 : i64} {
  func.func @_matmul_fused_kernel(%arg0: i32, %arg1: memref<512x147xbf16, #tpu.memory_space<vmem>>, %arg2: memref<147x64xbf16, #tpu.memory_space<vmem>>, %arg3: memref<1x64xf32, #tpu.memory_space<vmem>>, %arg4: memref<512x64xbf16, #tpu.memory_space<vmem>>) attributes {dimension_semantics = [#tpu.dimension_semantics<parallel>], iteration_bounds = array<i64: 1>, scalar_prefetch = 0 : i64, scratch_operands = 0 : i64, tpu.core_type = #tpu.core_type<tc>, window_params = [{transform_indices = @transform_0, window_bounds = array<i64: 512, 147>}, {pipeline_mode = #tpu.pipeline_mode<synchronous>, transform_indices = @transform_1, window_bounds = array<i64: 147, 64>}, {pipeline_mode = #tpu.pipeline_mode<synchronous>, transform_indices = @transform_2, window_bounds = array<i64: 1, 64>}, {transform_indices = @transform_3, window_bounds = array<i64: 512, 64>}]} {
    %c0 = arith.constant 0 : index
    %c0_0 = arith.constant 0 : index
    %0 = vector.load %arg1[%c0, %c0_0] : memref<512x147xbf16, #tpu.memory_space<vmem>>, vector<512x147xbf16>
    %c0_1 = arith.constant 0 : index
    %c0_2 = arith.constant 0 : index
    %1 = vector.load %arg2[%c0_1, %c0_2] : memref<147x64xbf16, #tpu.memory_space<vmem>>, vector<147x64xbf16>
    %cst = arith.constant dense<0.000000e+00> : vector<512x64xf32>
    %2 = tpu.matmul %0, %1, %cst {dimension_numbers = #tpu.dot_dimension_numbers<[1], [0], [0], [1], [0, 0, 1, 1], [], []>} : vector<512x147xbf16>, vector<147x64xbf16>, vector<512x64xf32> -> vector<512x64xf32>
    %c0_3 = arith.constant 0 : index
    %c0_4 = arith.constant 0 : index
    %3 = vector.load %arg3[%c0_3, %c0_4] : memref<1x64xf32, #tpu.memory_space<vmem>>, vector<1x64xf32>
    %4 = vector.broadcast %3 : vector<1x64xf32> to vector<512x64xf32>
    %5 = arith.addf %2, %4 : vector<512x64xf32>
    %cst_5 = arith.constant 0.000000e+00 : f32
    %6 = vector.broadcast %cst_5 : f32 to vector<512x64xf32>
    %7 = arith.maximumf %5, %6 : vector<512x64xf32>
    %8 = arith.truncf %7 : vector<512x64xf32> to vector<512x64xbf16>
    %c0_6 = arith.constant 0 : index
    %c0_7 = arith.constant 0 : index
    %9 = vector.load %arg4[%c0_6, %c0_7] : memref<512x64xbf16, #tpu.memory_space<vmem>>, vector<512x64xbf16>
    tpu.vector_store %arg4[%c0_6, %c0_7], %8 {strides = array<i32>} : memref<512x64xbf16, #tpu.memory_space<vmem>>, vector<512x64xbf16>,
    return
  }
  func.func @transform_0(%arg0: i32) -> (i32, i32) {
    %c0_i32 = arith.constant 0 : i32
    %c0_i32_0 = arith.constant 0 : i32
    return %arg0, %c0_i32 : i32, i32
  }
  func.func @transform_1(%arg0: i32) -> (i32, i32) {
    %c0_i32 = arith.constant 0 : i32
    %c0_i32_0 = arith.constant 0 : i32
    %c0_i32_1 = arith.constant 0 : i32
    return %c0_i32, %c0_i32_0 : i32, i32
  }
  func.func @transform_2(%arg0: i32) -> (i32, i32) {
    %c0_i32 = arith.constant 0 : i32
    %c0_i32_0 = arith.constant 0 : i32
    %c0_i32_1 = arith.constant 0 : i32
    return %c0_i32, %c0_i32_0 : i32, i32
  }
  func.func @transform_3(%arg0: i32) -> (i32, i32) {
    %c0_i32 = arith.constant 0 : i32
    %c0_i32_0 = arith.constant 0 : i32
    return %arg0, %c0_i32 : i32, i32
  }
}

</mosaic_0001>

<bundles_post_ra>
// kernel: tpu_custom_call.1
= control target key start
LH: loop header
LB: loop body
LE: loop exit
PB: predicated region body
PF: predicated region fallthrough
CT: control target
= control target key end

     0   :  { %vm544_vm0 = vcmask 1040384   ;;  %vm545_vm1 = vcmask 1041408   ;;  %v1496_v2 = vmov 65535   ;;  %vm447_vm2 = vcmask 154624   ;;  %s2336_s1 = inlined_call_operand.vmem [shape: bf16[147,64], index: 1, kind: input, shape index: {}]   ;;  %s2337_s0 = inlined_call_operand.vmem [shape: bf16[512,147], index: 0, kind: input, shape index: {}]   ;;  %s2338_s2 = inlined_call_operand.vmem [shape: f32[1,64], index: 2, kind: input, shape index: {}]   ;;  %s2339_s3 = inlined_call_operand.vmem [shape: bf16[512,64], index: 3, kind: output, shape index: {}]  }
   0x1   :  { %v1481_v0 = vld [vmem:[%s2336_s1 + $0x38] sm:$0xff]  ;;  %v97_v1 = vld [vmem:[%s2336_s1 + $0x48] sm:$0x3]  ;;  %v546_v3 = vsel %vm544_vm0, 4294967295, %v1496_v2  ;;  %v1480_v5 = vld [vmem:[%s2336_s1 + $0x30] sm:$0xff]  ;;  %vm1017_vm3 = vcmask 519168  }
   0x2   :  { %v427_v4 = vunpack.c.l.b16 %v97_v1  ;;  %551 = vmatpush.bf16.msra.mxu0 %v1481_v0  ;;  %1483 = vmatpush.bf16.msra.mxu2 %v1481_v0  ;;  %v547_v6 = vsel %vm545_vm1, %v546_v3, 0  ;;  %v1479_v9 = vld [vmem:[%s2336_s1 + $0x28] sm:$0xff]  ;;  %v1482_v10 = vld [vmem:[%s2336_s1 + $0x40] sm:$0xff]  ;;  %v1444_v13 = vld [vmem:[%s2337_s0 + $0x114] sm:$0xf] }
   0x3   :  { %v1410_v11 = vld [vmem:[%s2337_s0 + $0x4] sm:$0xf]  ;;  %v1090_v12 = vld [vmem:[%s2337_s0 + $0x8] sm:$0xf0]  ;;  %v1226_v14 = vld [vmem:[%s2337_s0 + $0x118] sm:$0xf0] }
   0x4   :  { %v437_v7 = vpack.c.b16 %v427_v4, %v427_v4  ;;  %v1093_v15 = vor.u32 %v1410_v11, %v1090_v12  ;;  %v1478_v16 = vld [vmem:[%s2336_s1 + $0x20] sm:$0xff]  ;;  %v1229_v17 = vor.u32 %v1444_v13, %v1226_v14  ;;  %v1477_v18 = vld [vmem:[%s2336_s1 + $0x18] sm:$0xff]  ;;  %v1476_v19 = vld [vmem:[%s2336_s1 + $0x10] sm:$0xff] }
   0x5   :  { %v1475_v20 = vld [vmem:[%s2336_s1 + $0x8] sm:$0xff]  ;;  %v1412_v21 = vld [vmem:[%s2337_s0 + $0x14] sm:$0xf]  ;;  %v1098_v22 = vld [vmem:[%s2337_s0 + $0x18] sm:$0xf0] }
   0x6   :  { %v549_v8 = vand.u32 %v547_v6, %v437_v7  ;;  %552 = vmatpush.bf16.msra.mxu0 %v1480_v5  ;;  %1484 = vmatpush.bf16.msra.mxu2 %v1480_v5  ;;  %v1446_v23 = vld [vmem:[%s2337_s0 + $0x124] sm:$0xf]  ;;  %v1234_v24 = vld [vmem:[%s2337_s0 + $0x128] sm:$0xf0]  ;;  %v1101_v25 = vor.u32 %v1412_v21, %v1098_v22  ;;  %v1088_v27 = vld [vmem:[%s2337_s0] sm:$0xf] }
   0x7   :  { %v1474_v26 = vld [vmem:[%s2336_s1] sm:$0xff]  ;;  %v1411_v28 = vld [vmem:[%s2337_s0 + $0x4] sm:$0xf0]  ;;  %v1237_v31 = vor.u32 %v1446_v23, %v1234_v24  ;;  %v1106_v35 = vld [vmem:[%s2337_s0 + $0x28] sm:$0xf0] }
   0x8   :  { %726 = vmatpush.bf16.msra.mxu1 %v549_v8  ;;  %1491 = vmatpush.bf16.msra.mxu3 %v549_v8  ;;  %v1216_v29 = vld [vmem:[%s2337_s0 + $0x100] sm:$0xf]  ;;  %v1443_v30 = vld [vmem:[%s2337_s0 + $0x104] sm:$0xf0]  ;;  %v1089_v32 = vor.u32 %v1411_v28, %v1088_v27  ;;  %v1414_v34 = vld [vmem:[%s2337_s0 + $0x24] sm:$0xf] }
   0x9   :  { %v1217_v33 = vor.u32 %v1443_v30, %v1216_v29  ;;  %v1448_v36 = vld [vmem:[%s2337_s0 + $0x134] sm:$0xf]  ;;  %v1242_v37 = vld [vmem:[%s2337_s0 + $0x138] sm:$0xf0]  ;;  %v1109_v38 = vor.u32 %v1414_v34, %v1106_v35  ;;  %v1096_v39 = vld [vmem:[%s2337_s0 + $0x10] sm:$0xf] }
   0xa   :  { %553 = vmatpush.bf16.msra.mxu0 %v1479_v9  ;;  %1485 = vmatpush.bf16.msra.mxu2 %v1479_v9  ;;  %v1413_v40 = vld [vmem:[%s2337_s0 + $0x14] sm:$0xf0]  ;;  %v1224_v41 = vld [vmem:[%s2337_s0 + $0x110] sm:$0xf]  ;;  %v1245_v43 = vor.u32 %v1448_v36, %v1242_v37  ;;  %v1416_v46 = vld [vmem:[%s2337_s0 + $0x34] sm:$0xf] }
   0xb   :  { %v1445_v42 = vld [vmem:[%s2337_s0 + $0x114] sm:$0xf0]  ;;  %v1097_v44 = vor.u32 %v1413_v40, %v1096_v39  ;;  %v1114_v47 = vld [vmem:[%s2337_s0 + $0x38] sm:$0xf0]  ;;  %v1450_v48 = vld [vmem:[%s2337_s0 + $0x144] sm:$0xf] }
   0xc   :  { %727 = vmatpush.bf16.msra.mxu1 %v1482_v10  ;;  %1492 = vmatpush.bf16.msra.mxu3 %v1482_v10  ;;  %v1225_v45 = vor.u32 %v1445_v42, %v1224_v41  ;;  %v1250_v49 = vld [vmem:[%s2337_s0 + $0x148] sm:$0xf0]  ;;  %v1117_v50 = vor.u32 %v1416_v46, %v1114_v47  ;;  %v1104_v51 = vld [vmem:[%s2337_s0 + $0x20] sm:$0xf]  ;;  %v1415_v52 = vld [vmem:[%s2337_s0 + $0x24] sm:$0xf0] }
   0xd   :  { %v1232_v53 = vld [vmem:[%s2337_s0 + $0x120] sm:$0xf]  ;;  %v1447_v54 = vld [vmem:[%s2337_s0 + $0x124] sm:$0xf0]  ;;  %v1253_v55 = vor.u32 %v1450_v48, %v1250_v49  ;;  %v1105_v56 = vor.u32 %v1415_v52, %v1104_v51  ;;  %v1418_v58 = vld [vmem:[%s2337_s0 + $0x44] sm:$0xf] }
   0xe   :  { %554 = vmatpush.bf16.msra.mxu0 %v1478_v16  ;;  %1486 = vmatpush.bf16.msra.mxu2 %v1478_v16  ;;  %v1233_v57 = vor.u32 %v1447_v54, %v1232_v53  ;;  %v1122_v59 = vld [vmem:[%s2337_s0 + $0x48] sm:$0xf0]  ;;  %v1452_v60 = vld [vmem:[%s2337_s0 + $0x154] sm:$0xf]  ;;  %v1258_v61 = vld [vmem:[%s2337_s0 + $0x158] sm:$0xf0] }
   0xf   :  { %1378 = vmatmul.msk.bf16.vlgmr.msra.gmra.mxu1 %vm447_vm2, %v1093_v15  ;;  %1395 = vmatmul.msk.bf16.vlgmr.msra.gmra.mxu3 %vm447_vm2, %v1229_v17  ;;  %v1125_v62 = vor.u32 %v1418_v58, %v1122_v59  ;;  %v1112_v63 = vld [vmem:[%s2337_s0 + $0x30] sm:$0xf]  ;;  %v1417_v0 = vld [vmem:[%s2337_s0 + $0x34] sm:$0xf0]  ;;  %v1261_v3 = vor.u32 %v1452_v60, %v1258_v61  ;;  %v1420_v6 = vld [vmem:[%s2337_s0 + $0x54] sm:$0xf] }
  0x10   :  { %v1240_v1 = vld [vmem:[%s2337_s0 + $0x130] sm:$0xf]  ;;  %v1449_v2 = vld [vmem:[%s2337_s0 + $0x134] sm:$0xf0]  ;;  %v1113_v4 = vor.u32 %v1417_v0, %v1112_v63  ;;  %v1130_v7 = vld [vmem:[%s2337_s0 + $0x58] sm:$0xf0] }
  0x11   :  { %v1241_v5 = vor.u32 %v1449_v2, %v1240_v1  ;;  %v1454_v8 = vld [vmem:[%s2337_s0 + $0x164] sm:$0xf]  ;;  %v1266_v9 = vld [vmem:[%s2337_s0 + $0x168] sm:$0xf0]  ;;  %v1133_v10 = vor.u32 %v1420_v6, %v1130_v7  ;;  %v1120_v11 = vld [vmem:[%s2337_s0 + $0x40] sm:$0xf] }
  0x12   :  { %555 = vmatpush.bf16.msra.mxu0 %v1477_v18  ;;  %1487 = vmatpush.bf16.msra.mxu2 %v1477_v18  ;;  %v1419_v12 = vld [vmem:[%s2337_s0 + $0x44] sm:$0xf0]  ;;  %v1248_v13 = vld [vmem:[%s2337_s0 + $0x140] sm:$0xf]  ;;  %v1269_v15 = vor.u32 %v1454_v8, %v1266_v9  ;;  %v1422_v18 = vld [vmem:[%s2337_s0 + $0x64] sm:$0xf] }
  0x13   :  { %v1451_v14 = vld [vmem:[%s2337_s0 + $0x144] sm:$0xf0]  ;;  %v1121_v16 = vor.u32 %v1419_v12, %v1120_v11  ;;  %v1274_v21 = vld [vmem:[%s2337_s0 + $0x178] sm:$0xf0]  ;;  %v1128_v23 = vld [vmem:[%s2337_s0 + $0x50] sm:$0xf] }
  0x14   :  { %v1249_v17 = vor.u32 %v1451_v14, %v1248_v13  ;;  %v1421_v24 = vld [vmem:[%s2337_s0 + $0x54] sm:$0xf0]  ;;  %v1424_v30 = vld [vmem:[%s2337_s0 + $0x74] sm:$0xf]  ;;  %v1136_v35 = vld [vmem:[%s2337_s0 + $0x60] sm:$0xf] }
  0x15   :  { %v1129_v28 = vor.u32 %v1421_v24, %v1128_v23  ;;  %v1423_v36 = vld [vmem:[%s2337_s0 + $0x64] sm:$0xf0]  ;;  %v1264_v37 = vld [vmem:[%s2337_s0 + $0x160] sm:$0xf]  ;;  %v1426_v42 = vld [vmem:[%s2337_s0 + $0x84] sm:$0xf] }
  0x16   :  { %556 = vmatpush.bf16.msra.mxu0 %v1476_v19  ;;  %1488 = vmatpush.bf16.msra.mxu2 %v1476_v19  ;;  %v1138_v19 = vld [vmem:[%s2337_s0 + $0x68] sm:$0xf0]  ;;  %v1137_v40 = vor.u32 %v1423_v36, %v1136_v35  ;;  %v1144_v47 = vld [vmem:[%s2337_s0 + $0x70] sm:$0xf]  ;;  %v1425_v48 = vld [vmem:[%s2337_s0 + $0x74] sm:$0xf0] }
  0x17   :  { %v1141_v22 = vor.u32 %v1422_v18, %v1138_v19  ;;  %v1457_v51 = vld [vmem:[%s2337_s0 + $0x174] sm:$0xf0]  ;;  %v1145_v53 = vor.u32 %v1425_v48, %v1144_v47  ;;  %v1162_v58 = vld [vmem:[%s2337_s0 + $0x98] sm:$0xf0]  ;;  %v1462_v59 = vld [vmem:[%s2337_s0 + $0x1a4] sm:$0xf] }
  0x18   :  { %v1298_v60 = vld [vmem:[%s2337_s0 + $0x1a8] sm:$0xf0]  ;;  %v1427_v63 = vld [vmem:[%s2337_s0 + $0x84] sm:$0xf0]  ;;  %v1794_v2 = vld [vmem:[%s2338_s2] ss:$0 sm:$0xff] }
  0x19   :  { %v1430_v18 = vld [vmem:[%s2337_s0 + $0xa4] sm:$0xf]  ;;  %v1170_v19 = vld [vmem:[%s2337_s0 + $0xa8] sm:$0xf0]  ;;  %v1160_v24 = vld [vmem:[%s2337_s0 + $0x90] sm:$0xf] }
  0x1a   :  { %557 = vmatpush.bf16.msra.mxu0 %v1475_v20  ;;  %1489 = vmatpush.bf16.msra.mxu2 %v1475_v20  ;;  %v1456_v20 = vld [vmem:[%s2337_s0 + $0x174] sm:$0xf]  ;;  %v1173_v23 = vor.u32 %v1430_v18, %v1170_v19  ;;  %v1178_v48 = vld [vmem:[%s2337_s0 + $0xb8] sm:$0xf0] }
  0x1b   :  { %v1277_v27 = vor.u32 %v1456_v20, %v1274_v21  ;;  %v1464_v21 = vld [vmem:[%s2337_s0 + $0x1b4] sm:$0xf] }
  0x1c   :  { %v1432_v47 = vld [vmem:[%s2337_s0 + $0xb4] sm:$0xf] }
  0x1e   :  { %558 = vmatpush.bf16.msra.mxu0 %v1474_v26  ;;  %1490 = vmatpush.bf16.msra.mxu2 %v1474_v26  ;;  %v1453_v26 = vld [vmem:[%s2337_s0 + $0x154] sm:$0xf0] }
  0x1f   :  { %1379 = vmatmul.msk.bf16.gmra.mxu1 %vm447_vm2, %v1101_v25  ;;  %1396 = vmatmul.msk.bf16.gmra.mxu3 %vm447_vm2, %v1237_v31  ;;  %v1256_v25 = vld [vmem:[%s2337_s0 + $0x150] sm:$0xf]  ;;  %v1146_v31 = vld [vmem:[%s2337_s0 + $0x78] sm:$0xf0] }
  0x20   :  { %v1257_v29 = vor.u32 %v1453_v26, %v1256_v25  ;;  %v1149_v34 = vor.u32 %v1424_v30, %v1146_v31  ;;  %v1429_v25 = vld [vmem:[%s2337_s0 + $0x94] sm:$0xf0] }
  0x21   :  { %559 = vmatmul.bf16.vlgmr.msra.gmra.mxu0 %v1089_v32  ;;  %639 = vmatmul.bf16.vlgmr.msra.gmra.mxu2 %v1217_v33  ;;  %v1458_v32 = vld [vmem:[%s2337_s0 + $0x184] sm:$0xf]  ;;  %v1282_v33 = vld [vmem:[%s2337_s0 + $0x188] sm:$0xf0]  ;;  %v1461_v30 = vld [vmem:[%s2337_s0 + $0x194] sm:$0xf0] }
  0x22   :  { %v1285_v39 = vor.u32 %v1458_v32, %v1282_v33 }
  0x2f   :  { %1380 = vmatmul.msk.bf16.gmra.mxu1 %vm447_vm2, %v1109_v38  ;;  %1397 = vmatmul.msk.bf16.gmra.mxu3 %vm447_vm2, %v1245_v43  ;;  %v1455_v38 = vld [vmem:[%s2337_s0 + $0x164] sm:$0xf0]  ;;  %v1154_v43 = vld [vmem:[%s2337_s0 + $0x88] sm:$0xf0] }
  0x30   :  { %v1265_v41 = vor.u32 %v1455_v38, %v1264_v37  ;;  %v1157_v46 = vor.u32 %v1426_v42, %v1154_v43 }
  0x31   :  { %564 = vmatmul.bf16.gmra.mxu0 %v1097_v44  ;;  %644 = vmatmul.bf16.gmra.mxu2 %v1225_v45  ;;  %v1460_v44 = vld [vmem:[%s2337_s0 + $0x194] sm:$0xf]  ;;  %v1290_v45 = vld [vmem:[%s2337_s0 + $0x198] sm:$0xf0] }
  0x32   :  { %v1293_v52 = vor.u32 %v1460_v44, %v1290_v45 }
  0x3f   :  { %1381 = vmatmul.msk.bf16.gmra.mxu1 %vm447_vm2, %v1117_v50  ;;  %1398 = vmatmul.msk.bf16.gmra.mxu3 %vm447_vm2, %v1253_v55  ;;  %v1272_v50 = vld [vmem:[%s2337_s0 + $0x170] sm:$0xf] }
  0x40   :  { %v1273_v54 = vor.u32 %v1457_v51, %v1272_v50  ;;  %v1466_v51 = vld [vmem:[%s2337_s0 + $0x1c4] sm:$0xf] }
  0x41   :  { %569 = vmatmul.bf16.gmra.mxu0 %v1105_v56  ;;  %649 = vmatmul.bf16.gmra.mxu2 %v1233_v57  ;;  %v1428_v57 = vld [vmem:[%s2337_s0 + $0x94] sm:$0xf] }
  0x42   :  { %v1165_v61 = vor.u32 %v1428_v57, %v1162_v58  ;;  %v1431_v57 = vld [vmem:[%s2337_s0 + $0xa4] sm:$0xf0] }
  0x4f   :  { %1382 = vmatmul.msk.bf16.gmra.mxu1 %vm447_vm2, %v1125_v62  ;;  %1399 = vmatmul.msk.bf16.gmra.mxu3 %vm447_vm2, %v1261_v3  ;;  %v1152_v62 = vld [vmem:[%s2337_s0 + $0x80] sm:$0xf] }
  0x50   :  { %v1280_v3 = vld [vmem:[%s2337_s0 + $0x180] sm:$0xf]  ;;  %v1153_v6 = vor.u32 %v1427_v63, %v1152_v62 }
  0x51   :  { %574 = vmatmul.bf16.gmra.mxu0 %v1113_v4  ;;  %654 = vmatmul.bf16.gmra.mxu2 %v1241_v5  ;;  %v1459_v4 = vld [vmem:[%s2337_s0 + $0x184] sm:$0xf0]  ;;  %v1301_v5 = vor.u32 %v1462_v59, %v1298_v60  ;;  %v1296_v60 = vld [vmem:[%s2337_s0 + $0x1a0] sm:$0xf] }
  0x52   :  { %v1281_v8 = vor.u32 %v1459_v4, %v1280_v3 }
  0x5f   :  { %1383 = vmatmul.msk.bf16.gmra.mxu1 %vm447_vm2, %v1133_v10  ;;  %1400 = vmatmul.msk.bf16.gmra.mxu3 %vm447_vm2, %v1269_v15 }
  0x61   :  { %579 = vmatmul.bf16.gmra.mxu0 %v1121_v16  ;;  %659 = vmatmul.bf16.gmra.mxu2 %v1249_v17 }
  0x6f   :  { %1384 = vmatmul.msk.bf16.gmra.mxu1 %vm447_vm2, %v1141_v22  ;;  %1401 = vmatmul.msk.bf16.gmra.mxu3 %vm447_vm2, %v1277_v27  ;;  %v1306_v22 = vld [vmem:[%s2337_s0 + $0x1b8] sm:$0xf0] }
  0x70   :  { %v1309_v31 = vor.u32 %v1464_v21, %v1306_v22  ;;  %v1434_v22 = vld [vmem:[%s2337_s0 + $0xc4] sm:$0xf] }
  0x71   :  { %584 = vmatmul.bf16.gmra.mxu0 %v1129_v28  ;;  %664 = vmatmul.bf16.gmra.mxu2 %v1257_v29  ;;  %v1288_v29 = vld [vmem:[%s2337_s0 + $0x190] sm:$0xf] }
  0x72   :  { %v1289_v36 = vor.u32 %v1461_v30, %v1288_v29 }
  0x7f   :  { %1385 = vmatmul.msk.bf16.gmra.mxu1 %vm447_vm2, %v1149_v34  ;;  %1402 = vmatmul.msk.bf16.gmra.mxu3 %vm447_vm2, %v1285_v39  ;;  %v1161_v34 = vor.u32 %v1429_v25, %v1160_v24 }
  0x81   :  { %589 = vmatmul.bf16.gmra.mxu0 %v1137_v40  ;;  %669 = vmatmul.bf16.gmra.mxu2 %v1265_v41 }
  0x8c   :  { %v729_v49 = vpop.f32.mrf.mxu1 }
  0x8f   :  { %1386 = vmatmul.msk.bf16.gmra.mxu1 %vm447_vm2, %v1157_v46  ;;  %1403 = vmatmul.msk.bf16.gmra.mxu3 %vm447_vm2, %v1293_v52  ;;  %v1314_v52 = vld [vmem:[%s2337_s0 + $0x1c8] sm:$0xf0] }
  0x90   :  { %v1317_v62 = vor.u32 %v1466_v51, %v1314_v52 }
  0x91   :  { %594 = vmatmul.bf16.gmra.mxu0 %v1145_v53  ;;  %674 = vmatmul.bf16.gmra.mxu2 %v1273_v54  ;;  %v1181_v54 = vor.u32 %v1432_v47, %v1178_v48 }
  0x92   :  { %v1769_v55 = vpop.f32.mrf.mxu3 }
  0x94   :  { %v731_v56 = vpop.f32.mrf.mxu1 }
  0x9a   :  { %v1789_v0 = vpop.f32.mrf.mxu3 }
  0x9c   :  { %v734_v1 = vpop.f32.mrf.mxu1 }
  0x9e   :  { %v560_v7 = vpop.f32.mrf.mxu0 }
  0x9f   :  { %1387 = vmatmul.msk.bf16.gmra.mxu1 %vm447_vm2, %v1165_v61  ;;  %v561_v9 = vadd.f32 %v1794_v2, %v560_v7  ;;  %1404 = vmatmul.msk.bf16.gmra.mxu3 %vm447_vm2, %v1301_v5  ;;  %v1463_v61 = vld [vmem:[%s2337_s0 + $0x1a4] sm:$0xf0] }
  0xa0   :  { %v1297_v7 = vor.u32 %v1463_v61, %v1296_v60  ;;  %v1194_v61 = vld [vmem:[%s2337_s0 + $0xd8] sm:$0xf0] }
  0xa1   :  { %v730_v10 = vadd.f32 %v729_v49, %v561_v9  ;;  %599 = vmatmul.bf16.gmra.mxu0 %v1153_v6  ;;  %679 = vmatmul.bf16.gmra.mxu2 %v1281_v8 }
  0xa2   :  { %v1805_v11 = vpop.f32.mrf.mxu3 }
  0xa3   :  { %v889_v12 = vmax.f32 %v730_v10, 0.0 }
  0xa4   :  { %v736_v13 = vpop.f32.mrf.mxu1  ;;  %v1807_v15 = vpop.f32.mrf.mxu2 }
  0xa5   :  { %v953_v14 = vpack.c.bf16 %v889_v12, %v889_v12 }
  0xa6   :  { %v562_v16 = vpop.f32.mrf.mxu0 }
  0xa7   :  { %1018 = vst.msk [vmem:[%s2339_s3] sm:$0xf] %vm1017_vm3, %v953_v14  ;;  %v563_v17 = vadd.f32 %v1794_v2, %v562_v16 }
  0xa9   :  { %v732_v20 = vadd.f32 %v731_v56, %v563_v17  ;;  %v1168_v56 = vld [vmem:[%s2337_s0 + $0xa0] sm:$0xf] }
  0xaa   :  { %v1832_v26 = vpop.f32.mrf.mxu3  ;;  %v1169_v4 = vor.u32 %v1431_v57, %v1168_v56 }
  0xab   :  { %v890_v27 = vmax.f32 %v732_v20, 0.0 }
  0xac   :  { %v739_v28 = vpop.f32.mrf.mxu1  ;;  %v1840_v33 = vpop.f32.mrf.mxu2 }
  0xad   :  { %v954_v32 = vpack.c.bf16 %v890_v27, %v890_v27  ;;  %v1468_v27 = vld [vmem:[%s2337_s0 + $0x1d4] sm:$0xf] }
  0xae   :  { %v565_v35 = vpop.f32.mrf.mxu0 }
  0xaf   :  { %1388 = vmatmul.msk.bf16.gmra.mxu1 %vm447_vm2, %v1173_v23  ;;  %1019 = vst.msk [vmem:[%s2339_s3 + $0x4] sm:$0xf] %vm1017_vm3, %v954_v32  ;;  %v566_v37 = vadd.f32 %v1794_v2, %v565_v35  ;;  %1405 = vmatmul.msk.bf16.gmra.mxu3 %vm447_vm2, %v1309_v31  ;;  %v1186_v23 = vld [vmem:[%s2337_s0 + $0xc8] sm:$0xf0]  ;;  %v1176_v31 = vld [vmem:[%s2337_s0 + $0xb0] sm:$0xf] }
  0xb0   :  { %v1189_v30 = vor.u32 %v1434_v22, %v1186_v23  ;;  %v1433_v32 = vld [vmem:[%s2337_s0 + $0xb4] sm:$0xf0] }
  0xb1   :  { %v735_v38 = vadd.f32 %v734_v1, %v566_v37  ;;  %604 = vmatmul.bf16.gmra.mxu0 %v1161_v34  ;;  %684 = vmatmul.bf16.gmra.mxu2 %v1289_v36  ;;  %v1304_v36 = vld [vmem:[%s2337_s0 + $0x1b0] sm:$0xf]  ;;  %v1465_v37 = vld [vmem:[%s2337_s0 + $0x1b4] sm:$0xf0] }
  0xb2   :  { %v1849_v39 = vpop.f32.mrf.mxu3 }
  0xb3   :  { %v891_v40 = vmax.f32 %v735_v38, 0.0 }
  0xb4   :  { %v741_v41 = vpop.f32.mrf.mxu1  ;;  %v645_v43 = vpop.f32.mrf.mxu2 }
  0xb5   :  { %v955_v42 = vpack.c.bf16 %v891_v40, %v891_v40  ;;  %v646_v44 = vadd.f32 %v1794_v2, %v645_v43  ;;  %v1177_v43 = vor.u32 %v1433_v32, %v1176_v31 }
  0xb6   :  { %v567_v45 = vpop.f32.mrf.mxu0 }
  0xb7   :  { %1020 = vst.msk [vmem:[%s2339_s3 + $0x8] sm:$0xf] %vm1017_vm3, %v955_v42  ;;  %v568_v46 = vadd.f32 %v1794_v2, %v567_v45  ;;  %v815_v49 = vadd.f32 %v1769_v55, %v646_v44 }
  0xb9   :  { %v737_v50 = vadd.f32 %v736_v13, %v568_v46  ;;  %v923_v53 = vmax.f32 %v815_v49, 0.0  ;;  %v1305_v46 = vor.u32 %v1465_v37, %v1304_v36  ;;  %v1202_v37 = vld [vmem:[%s2337_s0 + $0xe8] sm:$0xf0] }
  0xba   :  { %v1876_v55 = vpop.f32.mrf.mxu3 }
  0xbb   :  { %v892_v58 = vmax.f32 %v737_v50, 0.0  ;;  %v987_v63 = vpack.c.bf16 %v923_v53, %v923_v53 }
  0xbc   :  { %v744_v59 = vpop.f32.mrf.mxu1  ;;  %v647_v3 = vpop.f32.mrf.mxu2 }
  0xbd   :  { %v956_v1 = vpack.c.bf16 %v892_v58, %v892_v58  ;;  %1052 = vst.msk [vmem:[%s2339_s3 + $0x88] sm:$0xf] %vm1017_vm3, %v987_v63  ;;  %v648_v5 = vadd.f32 %v1794_v2, %v647_v3  ;;  %v1330_v3 = vld [vmem:[%s2337_s0 + $0x1e8] sm:$0xf0] }
  0xbe   :  { %v570_v6 = vpop.f32.mrf.mxu0 }
  0xbf   :  { %1389 = vmatmul.msk.bf16.gmra.mxu1 %vm447_vm2, %v1181_v54  ;;  %1021 = vst.msk [vmem:[%s2339_s3 + $0xc] sm:$0xf] %vm1017_vm3, %v956_v1  ;;  %v571_v8 = vadd.f32 %v1794_v2, %v570_v6  ;;  %1406 = vmatmul.msk.bf16.gmra.mxu3 %vm447_vm2, %v1317_v62  ;;  %v817_v9 = vadd.f32 %v1789_v0, %v648_v5  ;;  %v1470_v1 = vld [vmem:[%s2337_s0 + $0x1e4] sm:$0xf]  ;;  %v1184_v6 = vld [vmem:[%s2337_s0 + $0xc0] sm:$0xf] }
  0xc1   :  { %v740_v10 = vadd.f32 %v739_v28, %v571_v8  ;;  %609 = vmatmul.bf16.gmra.mxu0 %v1169_v4  ;;  %v924_v12 = vmax.f32 %v817_v9, 0.0  ;;  %689 = vmatmul.bf16.gmra.mxu2 %v1297_v7  ;;  %v1322_v28 = vld [vmem:[%s2337_s0 + $0x1d8] sm:$0xf0]  ;;  %v1435_v7 = vld [vmem:[%s2337_s0 + $0xc4] sm:$0xf0] }
  0xc2   :  { %v1897_v13 = vpop.f32.mrf.mxu3  ;;  %v1325_v38 = vor.u32 %v1468_v27, %v1322_v28 }
  0xc3   :  { %v893_v14 = vmax.f32 %v740_v10, 0.0  ;;  %v988_v17 = vpack.c.bf16 %v924_v12, %v924_v12  ;;  %v1312_v10 = vld [vmem:[%s2337_s0 + $0x1c0] sm:$0xf]  ;;  %v1467_v12 = vld [vmem:[%s2337_s0 + $0x1c4] sm:$0xf0] }
  0xc4   :  { %v746_v16 = vpop.f32.mrf.mxu1  ;;  %v650_v19 = vpop.f32.mrf.mxu2 }
  0xc5   :  { %v957_v18 = vpack.c.bf16 %v893_v14, %v893_v14  ;;  %1053 = vst.msk [vmem:[%s2339_s3 + $0x8c] sm:$0xf] %vm1017_vm3, %v988_v17  ;;  %v651_v20 = vadd.f32 %v1794_v2, %v650_v19  ;;  %v1333_v14 = vor.u32 %v1470_v1, %v1330_v3  ;;  %v1185_v19 = vor.u32 %v1435_v7, %v1184_v6 }
  0xc6   :  { %v572_v21 = vpop.f32.mrf.mxu0 }
  0xc7   :  { %1022 = vst.msk [vmem:[%s2339_s3 + $0x10] sm:$0xf] %vm1017_vm3, %v957_v18  ;;  %v573_v0 = vadd.f32 %v1794_v2, %v572_v21  ;;  %v820_v24 = vadd.f32 %v1805_v11, %v651_v20 }
  0xc9   :  { %v742_v25 = vadd.f32 %v741_v41, %v573_v0  ;;  %v925_v29 = vmax.f32 %v820_v24, 0.0  ;;  %v1313_v0 = vor.u32 %v1467_v12, %v1312_v10  ;;  %v1210_v12 = vld [vmem:[%s2337_s0 + $0xf8] sm:$0xf0] }
  0xca   :  { %v1928_v11 = vpop.f32.mrf.mxu3 }
  0xcb   :  { %v894_v34 = vmax.f32 %v742_v25, 0.0  ;;  %v989_v40 = vpack.c.bf16 %v925_v29, %v925_v29 }
  0xcc   :  { %v749_v35 = vpop.f32.mrf.mxu1  ;;  %v652_v42 = vpop.f32.mrf.mxu2 }
  0xcd   :  { %v958_v41 = vpack.c.bf16 %v894_v34, %v894_v34  ;;  %1054 = vst.msk [vmem:[%s2339_s3 + $0x90] sm:$0xf] %vm1017_vm3, %v989_v40  ;;  %v653_v44 = vadd.f32 %v1794_v2, %v652_v42  ;;  %v1338_v42 = vld [vmem:[%s2337_s0 + $0x1f8] sm:$0xf0] }
  0xce   :  { %v575_v45 = vpop.f32.mrf.mxu0 }
  0xcf   :  { %1390 = vmatmul.msk.bf16.gmra.mxu1 %vm447_vm2, %v1189_v30  ;;  %1023 = vst.msk [vmem:[%s2339_s3 + $0x14] sm:$0xf] %vm1017_vm3, %v958_v41  ;;  %v576_v47 = vadd.f32 %v1794_v2, %v575_v45  ;;  %1407 = vmatmul.msk.bf16.gmra.mxu3 %vm447_vm2, %v1325_v38  ;;  %v822_v48 = vadd.f32 %v1832_v26, %v653_v44  ;;  %v1472_v41 = vld [vmem:[%s2337_s0 + $0x1f4] sm:$0xf]  ;;  %v1192_v45 = vld [vmem:[%s2337_s0 + $0xd0] sm:$0xf] }
  0xd1   :  { %v745_v49 = vadd.f32 %v744_v59, %v576_v47  ;;  %614 = vmatmul.bf16.gmra.mxu0 %v1177_v43  ;;  %v926_v50 = vmax.f32 %v822_v48, 0.0  ;;  %694 = vmatmul.bf16.gmra.mxu2 %v1305_v46  ;;  %v1436_v59 = vld [vmem:[%s2337_s0 + $0xd4] sm:$0xf]  ;;  %v1437_v46 = vld [vmem:[%s2337_s0 + $0xd4] sm:$0xf0] }
  0xd2   :  { %v1949_v51 = vpop.f32.mrf.mxu3  ;;  %v1197_v5 = vor.u32 %v1436_v59, %v1194_v61  ;;  %v1320_v48 = vld [vmem:[%s2337_s0 + $0x1d0] sm:$0xf] }
  0xd3   :  { %v895_v52 = vmax.f32 %v745_v49, 0.0  ;;  %v990_v54 = vpack.c.bf16 %v926_v50, %v926_v50  ;;  %v1469_v49 = vld [vmem:[%s2337_s0 + $0x1d4] sm:$0xf0] }
  0xd4   :  { %v751_v53 = vpop.f32.mrf.mxu1  ;;  %v655_v57 = vpop.f32.mrf.mxu2 }
  0xd5   :  { %v959_v56 = vpack.c.bf16 %v895_v52, %v895_v52  ;;  %1055 = vst.msk [vmem:[%s2339_s3 + $0x94] sm:$0xf] %vm1017_vm3, %v990_v54  ;;  %v656_v58 = vadd.f32 %v1794_v2, %v655_v57  ;;  %v1341_v52 = vor.u32 %v1472_v41, %v1338_v42  ;;  %v1193_v57 = vor.u32 %v1437_v46, %v1192_v45  ;;  %v1442_v45 = vld [vmem:[%s2337_s0 + $0x104] sm:$0xf]  ;;  %v1218_v46 = vld [vmem:[%s2337_s0 + $0x108] sm:$0xf0] }
  0xd6   :  { %v577_v60 = vpop.f32.mrf.mxu0 }
  0xd7   :  { %1024 = vst.msk [vmem:[%s2339_s3 + $0x18] sm:$0xf] %vm1017_vm3, %v959_v56  ;;  %v578_v26 = vadd.f32 %v1794_v2, %v577_v60  ;;  %v825_v62 = vadd.f32 %v1849_v39, %v656_v58 }
  0xd9   :  { %v747_v63 = vadd.f32 %v746_v16, %v578_v26  ;;  %v927_v4 = vmax.f32 %v825_v62, 0.0  ;;  %v1321_v26 = vor.u32 %v1469_v49, %v1320_v48 }
  0xda   :  { %v1980_v39 = vpop.f32.mrf.mxu3 }
  0xdb   :  { %v896_v8 = vmax.f32 %v747_v63, 0.0  ;;  %v991_v16 = vpack.c.bf16 %v927_v4, %v927_v4 }
  0xdc   :  { %v754_v9 = vpop.f32.mrf.mxu1  ;;  %v657_v18 = vpop.f32.mrf.mxu2 }
  0xdd   :  { %v960_v17 = vpack.c.bf16 %v896_v8, %v896_v8  ;;  %1056 = vst.msk [vmem:[%s2339_s3 + $0x98] sm:$0xf] %vm1017_vm3, %v991_v16  ;;  %v658_v20 = vadd.f32 %v1794_v2, %v657_v18 }
  0xde   :  { %v580_v21 = vpop.f32.mrf.mxu0 }
  0xdf   :  { %1391 = vmatmul.msk.bf16.gmra.mxu1 %vm447_vm2, %v1197_v5  ;;  %1025 = vst.msk [vmem:[%s2339_s3 + $0x1c] sm:$0xf] %vm1017_vm3, %v960_v17  ;;  %v581_v22 = vadd.f32 %v1794_v2, %v580_v21  ;;  %1408 = vmatmul.msk.bf16.gmra.mxu3 %vm447_vm2, %v1333_v14  ;;  %v827_v23 = vadd.f32 %v1876_v55, %v658_v20  ;;  %v1439_v20 = vld [vmem:[%s2337_s0 + $0xe4] sm:$0xf0] }
  0xe1   :  { %v750_v24 = vadd.f32 %v749_v35, %v581_v22  ;;  %619 = vmatmul.bf16.gmra.mxu0 %v1185_v19  ;;  %v928_v25 = vmax.f32 %v827_v23, 0.0  ;;  %699 = vmatmul.bf16.gmra.mxu2 %v1313_v0  ;;  %v1438_v35 = vld [vmem:[%s2337_s0 + $0xe4] sm:$0xf]  ;;  %v1200_v19 = vld [vmem:[%s2337_s0 + $0xe0] sm:$0xf] }
  0xe2   :  { %v2001_v27 = vpop.f32.mrf.mxu3  ;;  %v1205_v44 = vor.u32 %v1438_v35, %v1202_v37  ;;  %v1328_v22 = vld [vmem:[%s2337_s0 + $0x1e0] sm:$0xf] }
  0xe3   :  { %v897_v28 = vmax.f32 %v750_v24, 0.0  ;;  %v992_v30 = vpack.c.bf16 %v928_v25, %v928_v25 }
  0xe4   :  { %v756_v29 = vpop.f32.mrf.mxu1  ;;  %v660_v32 = vpop.f32.mrf.mxu2 }
  0xe5   :  { %v961_v31 = vpack.c.bf16 %v897_v28, %v897_v28  ;;  %1057 = vst.msk [vmem:[%s2339_s3 + $0x9c] sm:$0xf] %vm1017_vm3, %v992_v30  ;;  %v661_v34 = vadd.f32 %v1794_v2, %v660_v32  ;;  %v1201_v28 = vor.u32 %v1439_v20, %v1200_v19 }
  0xe6   :  { %v582_v36 = vpop.f32.mrf.mxu0 }
  0xe7   :  { %1026 = vst.msk [vmem:[%s2339_s3 + $0x20] sm:$0xf] %vm1017_vm3, %v961_v31  ;;  %v583_v55 = vadd.f32 %v1794_v2, %v582_v36  ;;  %v830_v38 = vadd.f32 %v1897_v13, %v661_v34 }
  0xe9   :  { %v752_v40 = vadd.f32 %v751_v53, %v583_v55  ;;  %v929_v43 = vmax.f32 %v830_v38, 0.0 }
  0xea   :  { %v2038_v50 = vpop.f32.mrf.mxu3 }
  0xeb   :  { %v898_v13 = vmax.f32 %v752_v40, 0.0  ;;  %v993_v53 = vpack.c.bf16 %v929_v43, %v929_v43 }
  0xec   :  { %v759_v47 = vpop.f32.mrf.mxu1  ;;  %v662_v56 = vpop.f32.mrf.mxu2 }
  0xed   :  { %v962_v54 = vpack.c.bf16 %v898_v13, %v898_v13  ;;  %1058 = vst.msk [vmem:[%s2339_s3 + $0xa0] sm:$0xf] %vm1017_vm3, %v993_v53  ;;  %v663_v58 = vadd.f32 %v1794_v2, %v662_v56  ;;  %v1208_v53 = vld [vmem:[%s2337_s0 + $0xf0] sm:$0xf] }
  0xee   :  { %v585_v60 = vpop.f32.mrf.mxu0 }
  0xef   :  { %1392 = vmatmul.msk.bf16.gmra.mxu1 %vm447_vm2, %v1205_v44  ;;  %1027 = vst.msk [vmem:[%s2339_s3 + $0x24] sm:$0xf] %vm1017_vm3, %v962_v54  ;;  %v586_v59 = vadd.f32 %v1794_v2, %v585_v60  ;;  %1409 = vmatmul.msk.bf16.gmra.mxu3 %vm447_vm2, %v1341_v52  ;;  %v832_v61 = vadd.f32 %v1928_v11, %v663_v58  ;;  %v1441_v54 = vld [vmem:[%s2337_s0 + $0xf4] sm:$0xf0]  ;;  %v1336_v58 = vld [vmem:[%s2337_s0 + $0x1f0] sm:$0xf] }
  0xf0   :  { %v1221_v52 = vor.u32 %v1442_v45, %v1218_v46 }
  0xf1   :  { %v755_v62 = vadd.f32 %v754_v9, %v586_v59  ;;  %624 = vmatmul.bf16.gmra.mxu0 %v1193_v57  ;;  %v930_v63 = vmax.f32 %v832_v61, 0.0  ;;  %704 = vmatmul.bf16.gmra.mxu2 %v1321_v26  ;;  %v1440_v9 = vld [vmem:[%s2337_s0 + $0xf4] sm:$0xf]  ;;  %v1209_v61 = vor.u32 %v1441_v54, %v1208_v53 }
  0xf2   :  { %v2053_v7 = vpop.f32.mrf.mxu3  ;;  %v1213_v18 = vor.u32 %v1440_v9, %v1210_v12 }
  0xf3   :  { %v899_v1 = vmax.f32 %v755_v62, 0.0  ;;  %v994_v4 = vpack.c.bf16 %v930_v63, %v930_v63 }
  0xf4   :  { %v761_v3 = vpop.f32.mrf.mxu1  ;;  %v665_v6 = vpop.f32.mrf.mxu2 }
  0xf5   :  { %v963_v5 = vpack.c.bf16 %v899_v1, %v899_v1  ;;  %1059 = vst.msk [vmem:[%s2339_s3 + $0xa4] sm:$0xf] %vm1017_vm3, %v994_v4  ;;  %v666_v8 = vadd.f32 %v1794_v2, %v665_v6 }
  0xf6   :  { %v587_v10 = vpop.f32.mrf.mxu0 }
  0xf7   :  { %1028 = vst.msk [vmem:[%s2339_s3 + $0x28] sm:$0xf] %vm1017_vm3, %v963_v5  ;;  %v588_v11 = vadd.f32 %v1794_v2, %v587_v10  ;;  %v835_v14 = vadd.f32 %v1949_v51, %v666_v8  ;;  %v1471_v51 = vld [vmem:[%s2337_s0 + $0x1e4] sm:$0xf0] }
  0xf8   :  { %v1329_v31 = vor.u32 %v1471_v51, %v1328_v22 }
  0xf9   :  { %v757_v16 = vadd.f32 %v756_v29, %v588_v11  ;;  %v931_v17 = vmax.f32 %v835_v14, 0.0 }
  0xfa   :  { %v2095_v34 = vpop.f32.mrf.mxu3 }
  0xfb   :  { %v900_v21 = vmax.f32 %v757_v16, 0.0  ;;  %v995_v23 = vpack.c.bf16 %v931_v17, %v931_v17 }
  0xfc   :  { %v764_v0 = vpop.f32.mrf.mxu1  ;;  %v667_v25 = vpop.f32.mrf.mxu2 }
  0xfd   :  { %v964_v24 = vpack.c.bf16 %v900_v21, %v900_v21  ;;  %1060 = vst.msk [vmem:[%s2339_s3 + $0xa8] sm:$0xf] %vm1017_vm3, %v995_v23  ;;  %v668_v29 = vadd.f32 %v1794_v2, %v667_v25 }
  0xfe   :  { %v590_v30 = vpop.f32.mrf.mxu0 }
  0xff   :  { %1393 = vmatmul.msk.bf16.gmra.mxu1 %vm447_vm2, %v1213_v18  ;;  %1029 = vst.msk [vmem:[%s2339_s3 + $0x2c] sm:$0xf] %vm1017_vm3, %v964_v24  ;;  %v591_v32 = vadd.f32 %v1794_v2, %v590_v30  ;;  %v837_v36 = vadd.f32 %v1980_v39, %v668_v29 }
 0x101   :  { %v760_v55 = vadd.f32 %v759_v47, %v591_v32  ;;  %629 = vmatmul.bf16.gmra.mxu0 %v1201_v28  ;;  %v932_v35 = vmax.f32 %v837_v36, 0.0  ;;  %709 = vmatmul.bf16.gmra.mxu2 %v1329_v31 }
 0x102   :  { %v2115_v48 = vpop.f32.mrf.mxu3 }
 0x103   :  { %v901_v37 = vmax.f32 %v760_v55, 0.0  ;;  %v996_v40 = vpack.c.bf16 %v932_v35, %v932_v35 }
 0x104   :  { %v766_v38 = vpop.f32.mrf.mxu1  ;;  %v670_v42 = vpop.f32.mrf.mxu2 }
 0x105   :  { %v965_v41 = vpack.c.bf16 %v901_v37, %v901_v37  ;;  %1061 = vst.msk [vmem:[%s2339_s3 + $0xac] sm:$0xf] %vm1017_vm3, %v996_v40  ;;  %v671_v43 = vadd.f32 %v1794_v2, %v670_v42 }
 0x106   :  { %v592_v44 = vpop.f32.mrf.mxu0 }
 0x107   :  { %1030 = vst.msk [vmem:[%s2339_s3 + $0x30] sm:$0xf] %vm1017_vm3, %v965_v41  ;;  %v593_v39 = vadd.f32 %v1794_v2, %v592_v44  ;;  %v840_v13 = vadd.f32 %v2001_v27, %v671_v43  ;;  %v1473_v27 = vld [vmem:[%s2337_s0 + $0x1f4] sm:$0xf0] }
 0x108   :  { %v1337_v1 = vor.u32 %v1473_v27, %v1336_v58 }
 0x109   :  { %v762_v47 = vadd.f32 %v761_v3, %v593_v39  ;;  %v933_v49 = vmax.f32 %v840_v13, 0.0 }
 0x10a   :  { %v851_v11 = vpop.f32.mrf.mxu3 }
 0x10b   :  { %v902_v56 = vmax.f32 %v762_v47, 0.0  ;;  %v997_v60 = vpack.c.bf16 %v933_v49, %v933_v49 }
 0x10c   :  { %v769_v57 = vpop.f32.mrf.mxu1  ;;  %v672_v59 = vpop.f32.mrf.mxu2 }
 0x10d   :  { %v966_v26 = vpack.c.bf16 %v902_v56, %v902_v56  ;;  %1062 = vst.msk [vmem:[%s2339_s3 + $0xb0] sm:$0xf] %vm1017_vm3, %v997_v60  ;;  %v673_v62 = vadd.f32 %v1794_v2, %v672_v59 }
 0x10e   :  { %v595_v63 = vpop.f32.mrf.mxu0 }
 0x10f   :  { %1394 = vmatmul.msk.bf16.gmra.mxu1 %vm447_vm2, %v1221_v52  ;;  %1031 = vst.msk [vmem:[%s2339_s3 + $0x34] sm:$0xf] %vm1017_vm3, %v966_v26  ;;  %v596_v3 = vadd.f32 %v1794_v2, %v595_v63  ;;  %v842_v4 = vadd.f32 %v2038_v50, %v673_v62 }
 0x111   :  { %v765_v5 = vadd.f32 %v764_v0, %v596_v3  ;;  %634 = vmatmul.bf16.gmra.mxu0 %v1209_v61  ;;  %v934_v6 = vmax.f32 %v842_v4, 0.0  ;;  %714 = vmatmul.bf16.gmra.mxu2 %v1337_v1 }
 0x112   :  { %v854_v24 = vpop.f32.mrf.mxu3 }
 0x113   :  { %v903_v8 = vmax.f32 %v765_v5, 0.0  ;;  %v998_v9 = vpack.c.bf16 %v934_v6, %v934_v6 }
 0x114   :  { %v771_v10 = vpop.f32.mrf.mxu1  ;;  %v675_v14 = vpop.f32.mrf.mxu2 }
 0x115   :  { %v967_v12 = vpack.c.bf16 %v903_v8, %v903_v8  ;;  %1063 = vst.msk [vmem:[%s2339_s3 + $0xb4] sm:$0xf] %vm1017_vm3, %v998_v9  ;;  %v676_v16 = vadd.f32 %v1794_v2, %v675_v14 }
 0x116   :  { %v597_v17 = vpop.f32.mrf.mxu0 }
 0x117   :  { %1032 = vst.msk [vmem:[%s2339_s3 + $0x38] sm:$0xf] %vm1017_vm3, %v967_v12  ;;  %v598_v50 = vadd.f32 %v1794_v2, %v597_v17  ;;  %v845_v18 = vadd.f32 %v2053_v7, %v676_v16 }
 0x119   :  { %v767_v19 = vadd.f32 %v766_v38, %v598_v50  ;;  %v935_v20 = vmax.f32 %v845_v18, 0.0 }
 0x11a   :  { %v856_v41 = vpop.f32.mrf.mxu3 }
 0x11b   :  { %v904_v21 = vmax.f32 %v767_v19, 0.0  ;;  %v999_v22 = vpack.c.bf16 %v935_v20, %v935_v20 }
 0x11c   :  { %v774_v0 = vpop.f32.mrf.mxu1  ;;  %v677_v23 = vpop.f32.mrf.mxu2 }
 0x11d   :  { %v968_v51 = vpack.c.bf16 %v904_v21, %v904_v21  ;;  %1064 = vst.msk [vmem:[%s2339_s3 + $0xb8] sm:$0xf] %vm1017_vm3, %v999_v22  ;;  %v678_v25 = vadd.f32 %v1794_v2, %v677_v23 }
 0x11e   :  { %v600_v28 = vpop.f32.mrf.mxu0 }
 0x11f   :  { %1033 = vst.msk [vmem:[%s2339_s3 + $0x3c] sm:$0xf] %vm1017_vm3, %v968_v51  ;;  %v601_v7 = vadd.f32 %v1794_v2, %v600_v28  ;;  %v847_v29 = vadd.f32 %v2095_v34, %v678_v25 }
 0x121   :  { %v770_v30 = vadd.f32 %v769_v57, %v601_v7  ;;  %v936_v31 = vmax.f32 %v847_v29, 0.0 }
 0x122   :  { %v859_v56 = vpop.f32.mrf.mxu3 }
 0x123   :  { %v905_v32 = vmax.f32 %v770_v30, 0.0  ;;  %v1000_v55 = vpack.c.bf16 %v936_v31, %v936_v31 }
 0x124   :  { %v776_v36 = vpop.f32.mrf.mxu1  ;;  %v680_v37 = vpop.f32.mrf.mxu2 }
 0x125   :  { %v969_v35 = vpack.c.bf16 %v905_v32, %v905_v32  ;;  %1065 = vst.msk [vmem:[%s2339_s3 + $0xbc] sm:$0xf] %vm1017_vm3, %v1000_v55  ;;  %v681_v38 = vadd.f32 %v1794_v2, %v680_v37 }
 0x126   :  { %v602_v40 = vpop.f32.mrf.mxu0 }
 0x127   :  { %1034 = vst.msk [vmem:[%s2339_s3 + $0x40] sm:$0xf] %vm1017_vm3, %v969_v35  ;;  %v603_v34 = vadd.f32 %v1794_v2, %v602_v40  ;;  %v850_v42 = vadd.f32 %v2115_v48, %v681_v38 }
 0x129   :  { %v772_v43 = vadd.f32 %v771_v10, %v603_v34  ;;  %v937_v44 = vmax.f32 %v850_v42, 0.0 }
 0x12a   :  { %v861_v8 = vpop.f32.mrf.mxu3 }
 0x12b   :  { %v906_v39 = vmax.f32 %v772_v43, 0.0  ;;  %v1001_v46 = vpack.c.bf16 %v937_v44, %v937_v44 }
 0x12c   :  { %v779_v45 = vpop.f32.mrf.mxu1  ;;  %v682_v47 = vpop.f32.mrf.mxu2 }
 0x12d   :  { %v970_v13 = vpack.c.bf16 %v906_v39, %v906_v39  ;;  %1066 = vst.msk [vmem:[%s2339_s3 + $0xc0] sm:$0xf] %vm1017_vm3, %v1001_v46  ;;  %v683_v49 = vadd.f32 %v1794_v2, %v682_v47 }
 0x12e   :  { %v605_v52 = vpop.f32.mrf.mxu0 }
 0x12f   :  { %1035 = vst.msk [vmem:[%s2339_s3 + $0x44] sm:$0xf] %vm1017_vm3, %v970_v13  ;;  %v606_v48 = vadd.f32 %v1794_v2, %v605_v52  ;;  %v852_v53 = vadd.f32 %v851_v11, %v683_v49 }
 0x131   :  { %v775_v54 = vadd.f32 %v774_v0, %v606_v48  ;;  %v938_v57 = vmax.f32 %v852_v53, 0.0 }
 0x132   :  { %v864_v51 = vpop.f32.mrf.mxu3 }
 0x133   :  { %v907_v58 = vmax.f32 %v775_v54, 0.0  ;;  %v1002_v60 = vpack.c.bf16 %v938_v57, %v938_v57 }
 0x134   :  { %v781_v27 = vpop.f32.mrf.mxu1  ;;  %v685_v59 = vpop.f32.mrf.mxu2 }
 0x135   :  { %v971_v26 = vpack.c.bf16 %v907_v58, %v907_v58  ;;  %1067 = vst.msk [vmem:[%s2339_s3 + $0xc4] sm:$0xf] %vm1017_vm3, %v1002_v60  ;;  %v686_v61 = vadd.f32 %v1794_v2, %v685_v59 }
 0x136   :  { %v607_v62 = vpop.f32.mrf.mxu0 }
 0x137   :  { %1036 = vst.msk [vmem:[%s2339_s3 + $0x48] sm:$0xf] %vm1017_vm3, %v971_v26  ;;  %v608_v63 = vadd.f32 %v1794_v2, %v607_v62  ;;  %v855_v1 = vadd.f32 %v854_v24, %v686_v61 }
 0x139   :  { %v777_v3 = vadd.f32 %v776_v36, %v608_v63  ;;  %v939_v4 = vmax.f32 %v855_v1, 0.0 }
 0x13a   :  { %v866_v40 = vpop.f32.mrf.mxu3 }
 0x13b   :  { %v908_v5 = vmax.f32 %v777_v3, 0.0  ;;  %v1003_v10 = vpack.c.bf16 %v939_v4, %v939_v4 }
 0x13c   :  { %v784_v6 = vpop.f32.mrf.mxu1  ;;  %v687_v9 = vpop.f32.mrf.mxu2 }
 0x13d   :  { %v972_v11 = vpack.c.bf16 %v908_v5, %v908_v5  ;;  %1068 = vst.msk [vmem:[%s2339_s3 + $0xc8] sm:$0xf] %vm1017_vm3, %v1003_v10  ;;  %v688_v12 = vadd.f32 %v1794_v2, %v687_v9 }
 0x13e   :  { %v610_v14 = vpop.f32.mrf.mxu0 }
 0x13f   :  { %1037 = vst.msk [vmem:[%s2339_s3 + $0x4c] sm:$0xf] %vm1017_vm3, %v972_v11  ;;  %v611_v16 = vadd.f32 %v1794_v2, %v610_v14  ;;  %v857_v17 = vadd.f32 %v856_v41, %v688_v12 }
 0x141   :  { %v780_v50 = vadd.f32 %v779_v45, %v611_v16  ;;  %v940_v18 = vmax.f32 %v857_v17, 0.0 }
 0x142   :  { %v869_v53 = vpop.f32.mrf.mxu3 }
 0x143   :  { %v909_v19 = vmax.f32 %v780_v50, 0.0  ;;  %v1004_v21 = vpack.c.bf16 %v940_v18, %v940_v18 }
 0x144   :  { %v786_v20 = vpop.f32.mrf.mxu1  ;;  %v690_v22 = vpop.f32.mrf.mxu2 }
 0x145   :  { %v973_v0 = vpack.c.bf16 %v909_v19, %v909_v19  ;;  %1069 = vst.msk [vmem:[%s2339_s3 + $0xcc] sm:$0xf] %vm1017_vm3, %v1004_v21  ;;  %v691_v23 = vadd.f32 %v1794_v2, %v690_v22 }
 0x146   :  { %v612_v24 = vpop.f32.mrf.mxu0 }
 0x147   :  { %1038 = vst.msk [vmem:[%s2339_s3 + $0x50] sm:$0xf] %vm1017_vm3, %v973_v0  ;;  %v613_v25 = vadd.f32 %v1794_v2, %v612_v24  ;;  %v860_v28 = vadd.f32 %v859_v56, %v691_v23 }
 0x149   :  { %v782_v7 = vadd.f32 %v781_v27, %v613_v25  ;;  %v941_v29 = vmax.f32 %v860_v28, 0.0 }
 0x14a   :  { %v871_v5 = vpop.f32.mrf.mxu3 }
 0x14b   :  { %v910_v30 = vmax.f32 %v782_v7, 0.0  ;;  %v1005_v32 = vpack.c.bf16 %v941_v29, %v941_v29 }
 0x14c   :  { %v789_v31 = vpop.f32.mrf.mxu1  ;;  %v692_v55 = vpop.f32.mrf.mxu2 }
 0x14d   :  { %v974_v36 = vpack.c.bf16 %v910_v30, %v910_v30  ;;  %1070 = vst.msk [vmem:[%s2339_s3 + $0xd0] sm:$0xf] %vm1017_vm3, %v1005_v32  ;;  %v693_v35 = vadd.f32 %v1794_v2, %v692_v55 }
 0x14e   :  { %v615_v37 = vpop.f32.mrf.mxu0 }
 0x14f   :  { %1039 = vst.msk [vmem:[%s2339_s3 + $0x54] sm:$0xf] %vm1017_vm3, %v974_v36  ;;  %v616_v38 = vadd.f32 %v1794_v2, %v615_v37  ;;  %v862_v34 = vadd.f32 %v861_v8, %v693_v35 }
 0x151   :  { %v785_v41 = vadd.f32 %v784_v6, %v616_v38  ;;  %v942_v42 = vmax.f32 %v862_v34, 0.0 }
 0x152   :  { %v874_v0 = vpop.f32.mrf.mxu3 }
 0x153   :  { %v911_v43 = vmax.f32 %v785_v41, 0.0  ;;  %v1006_v39 = vpack.c.bf16 %v942_v42, %v942_v42 }
 0x154   :  { %v791_v44 = vpop.f32.mrf.mxu1  ;;  %v695_v46 = vpop.f32.mrf.mxu2 }
 0x155   :  { %v975_v45 = vpack.c.bf16 %v911_v43, %v911_v43  ;;  %1071 = vst.msk [vmem:[%s2339_s3 + $0xd4] sm:$0xf] %vm1017_vm3, %v1006_v39  ;;  %v696_v13 = vadd.f32 %v1794_v2, %v695_v46 }
 0x156   :  { %v617_v47 = vpop.f32.mrf.mxu0 }
 0x157   :  { %1040 = vst.msk [vmem:[%s2339_s3 + $0x58] sm:$0xf] %vm1017_vm3, %v975_v45  ;;  %v618_v49 = vadd.f32 %v1794_v2, %v617_v47  ;;  %v865_v52 = vadd.f32 %v864_v51, %v696_v13 }
 0x159   :  { %v787_v48 = vadd.f32 %v786_v20, %v618_v49  ;;  %v943_v54 = vmax.f32 %v865_v52, 0.0 }
 0x15a   :  { %v876_v37 = vpop.f32.mrf.mxu3 }
 0x15b   :  { %v912_v56 = vmax.f32 %v787_v48, 0.0  ;;  %v1007_v58 = vpack.c.bf16 %v943_v54, %v943_v54 }
 0x15c   :  { %v794_v57 = vpop.f32.mrf.mxu1  ;;  %v697_v60 = vpop.f32.mrf.mxu2 }
 0x15d   :  { %v976_v27 = vpack.c.bf16 %v912_v56, %v912_v56  ;;  %1072 = vst.msk [vmem:[%s2339_s3 + $0xd8] sm:$0xf] %vm1017_vm3, %v1007_v58  ;;  %v698_v26 = vadd.f32 %v1794_v2, %v697_v60 }
 0x15e   :  { %v620_v59 = vpop.f32.mrf.mxu0 }
 0x15f   :  { %1041 = vst.msk [vmem:[%s2339_s3 + $0x5c] sm:$0xf] %vm1017_vm3, %v976_v27  ;;  %v621_v61 = vadd.f32 %v1794_v2, %v620_v59  ;;  %v867_v62 = vadd.f32 %v866_v40, %v698_v26 }
 0x161   :  { %v790_v63 = vadd.f32 %v789_v31, %v621_v61  ;;  %v944_v1 = vmax.f32 %v867_v62, 0.0  ;;  %v641_v62 = vadd.f32 %v1794_v2, %v1807_v15 }
 0x162   :  { %v879_v52 = vpop.f32.mrf.mxu3 }
 0x163   :  { %v913_v3 = vmax.f32 %v790_v63, 0.0  ;;  %v1008_v6 = vpack.c.bf16 %v944_v1, %v944_v1 }
 0x164   :  { %v796_v4 = vpop.f32.mrf.mxu1  ;;  %v700_v10 = vpop.f32.mrf.mxu2 }
 0x165   :  { %v977_v8 = vpack.c.bf16 %v913_v3, %v913_v3  ;;  %1073 = vst.msk [vmem:[%s2339_s3 + $0xdc] sm:$0xf] %vm1017_vm3, %v1008_v6  ;;  %v701_v11 = vadd.f32 %v1794_v2, %v700_v10 }
 0x166   :  { %v622_v9 = vpop.f32.mrf.mxu0 }
 0x167   :  { %1042 = vst.msk [vmem:[%s2339_s3 + $0x60] sm:$0xf] %vm1017_vm3, %v977_v8  ;;  %v623_v12 = vadd.f32 %v1794_v2, %v622_v9  ;;  %v870_v14 = vadd.f32 %v869_v53, %v701_v11  ;;  %v1495_v9 = vld [vmem:[%s2338_s2] ss:$0 sm:$0xff] }
 0x169   :  { %v792_v16 = vadd.f32 %v791_v44, %v623_v12  ;;  %v945_v17 = vmax.f32 %v870_v14, 0.0 }
 0x16a   :  { %v881_v3 = vpop.f32.mrf.mxu3 }
 0x16b   :  { %v914_v50 = vmax.f32 %v792_v16, 0.0  ;;  %v1009_v19 = vpack.c.bf16 %v945_v17, %v945_v17 }
 0x16c   :  { %v799_v18 = vpop.f32.mrf.mxu1  ;;  %v702_v21 = vpop.f32.mrf.mxu2 }
 0x16d   :  { %v978_v20 = vpack.c.bf16 %v914_v50, %v914_v50  ;;  %1074 = vst.msk [vmem:[%s2339_s3 + $0xe0] sm:$0xf] %vm1017_vm3, %v1009_v19  ;;  %v703_v22 = vadd.f32 %v1794_v2, %v702_v21  ;;  %v643_v50 = vadd.f32 %v1495_v9, %v1840_v33 }
 0x16e   :  { %v625_v51 = vpop.f32.mrf.mxu0 }
 0x16f   :  { %1043 = vst.msk [vmem:[%s2339_s3 + $0x64] sm:$0xf] %vm1017_vm3, %v978_v20  ;;  %v626_v23 = vadd.f32 %v1794_v2, %v625_v51  ;;  %v872_v24 = vadd.f32 %v871_v5, %v703_v22 }
 0x171   :  { %v795_v25 = vadd.f32 %v794_v57, %v626_v23  ;;  %v946_v28 = vmax.f32 %v872_v24, 0.0 }
 0x172   :  { %v884_v51 = vpop.f32.mrf.mxu3 }
 0x173   :  { %v915_v7 = vmax.f32 %v795_v25, 0.0  ;;  %v1010_v30 = vpack.c.bf16 %v946_v28, %v946_v28 }
 0x174   :  { %v801_v29 = vpop.f32.mrf.mxu1  ;;  %v705_v32 = vpop.f32.mrf.mxu2 }
 0x175   :  { %v979_v31 = vpack.c.bf16 %v915_v7, %v915_v7  ;;  %1075 = vst.msk [vmem:[%s2339_s3 + $0xe4] sm:$0xf] %vm1017_vm3, %v1010_v30  ;;  %v706_v36 = vadd.f32 %v1794_v2, %v705_v32 }
 0x176   :  { %v627_v55 = vpop.f32.mrf.mxu0 }
 0x177   :  { %1044 = vst.msk [vmem:[%s2339_s3 + $0x68] sm:$0xf] %vm1017_vm3, %v979_v31  ;;  %v628_v35 = vadd.f32 %v1794_v2, %v627_v55  ;;  %v875_v38 = vadd.f32 %v874_v0, %v706_v36 }
 0x179   :  { %v797_v40 = vadd.f32 %v796_v4, %v628_v35  ;;  %v947_v34 = vmax.f32 %v875_v38, 0.0 }
 0x17a   :  { %v886_v38 = vpop.f32.mrf.mxu3 }
 0x17b   :  { %v916_v41 = vmax.f32 %v797_v40, 0.0  ;;  %v1011_v43 = vpack.c.bf16 %v947_v34, %v947_v34 }
 0x17c   :  { %v804_v42 = vpop.f32.mrf.mxu1  ;;  %v707_v39 = vpop.f32.mrf.mxu2 }
 0x17d   :  { %v980_v44 = vpack.c.bf16 %v916_v41, %v916_v41  ;;  %1076 = vst.msk [vmem:[%s2339_s3 + $0xe8] sm:$0xf] %vm1017_vm3, %v1011_v43  ;;  %v708_v45 = vadd.f32 %v1794_v2, %v707_v39 }
 0x17e   :  { %v630_v46 = vpop.f32.mrf.mxu0 }
 0x17f   :  { %1045 = vst.msk [vmem:[%s2339_s3 + $0x6c] sm:$0xf] %vm1017_vm3, %v980_v44  ;;  %v631_v13 = vadd.f32 %v1794_v2, %v630_v46  ;;  %v877_v47 = vadd.f32 %v876_v37, %v708_v45 }
 0x181   :  { %v800_v49 = vadd.f32 %v799_v18, %v631_v13  ;;  %v948_v48 = vmax.f32 %v877_v47, 0.0 }
 0x183   :  { %v917_v53 = vmax.f32 %v800_v49, 0.0  ;;  %v1012_v56 = vpack.c.bf16 %v948_v48, %v948_v48 }
 0x184   :  { %v806_v54 = vpop.f32.mrf.mxu1  ;;  %v710_v58 = vpop.f32.mrf.mxu2 }
 0x185   :  { %v981_v57 = vpack.c.bf16 %v917_v53, %v917_v53  ;;  %1077 = vst.msk [vmem:[%s2339_s3 + $0xec] sm:$0xf] %vm1017_vm3, %v1012_v56  ;;  %v711_v27 = vadd.f32 %v1794_v2, %v710_v58 }
 0x186   :  { %v632_v60 = vpop.f32.mrf.mxu0 }
 0x187   :  { %1046 = vst.msk [vmem:[%s2339_s3 + $0x70] sm:$0xf] %vm1017_vm3, %v981_v57  ;;  %v633_v26 = vadd.f32 %v1794_v2, %v632_v60  ;;  %v880_v59 = vadd.f32 %v879_v52, %v711_v27 }
 0x189   :  { %v802_v61 = vadd.f32 %v801_v29, %v633_v26  ;;  %v949_v63 = vmax.f32 %v880_v59, 0.0 }
 0x18b   :  { %v918_v1 = vmax.f32 %v802_v61, 0.0  ;;  %v1013_v5 = vpack.c.bf16 %v949_v63, %v949_v63 }
 0x18c   :  { %v809_v4 = vpop.f32.mrf.mxu1  ;;  %v712_v10 = vpop.f32.mrf.mxu2 }
 0x18d   :  { %v810_v6 = vadd.f32 %v809_v4, %v641_v62  ;;  %v982_v8 = vpack.c.bf16 %v918_v1, %v918_v1  ;;  %1078 = vst.msk [vmem:[%s2339_s3 + $0xf0] sm:$0xf] %vm1017_vm3, %v1013_v5  ;;  %v713_v12 = vadd.f32 %v1495_v9, %v712_v10 }
 0x18e   :  { %v635_v2 = vpop.f32.mrf.mxu0 }
 0x18f   :  { %v921_v11 = vmax.f32 %v810_v6, 0.0  ;;  %1047 = vst.msk [vmem:[%s2339_s3 + $0x74] sm:$0xf] %vm1017_vm3, %v982_v8  ;;  %v636_v15 = vadd.f32 %v1495_v9, %v635_v2  ;;  %v882_v16 = vadd.f32 %v881_v3, %v713_v12 }
 0x191   :  { %v985_v14 = vpack.c.bf16 %v921_v11, %v921_v11  ;;  %v805_v17 = vadd.f32 %v804_v42, %v636_v15  ;;  %v950_v18 = vmax.f32 %v882_v16, 0.0 }
 0x193   :  { %1050 = vst.msk [vmem:[%s2339_s3 + $0x80] sm:$0xf] %vm1017_vm3, %v985_v14  ;;  %v919_v19 = vmax.f32 %v805_v17, 0.0  ;;  %v1014_v21 = vpack.c.bf16 %v950_v18, %v950_v18 }
 0x194   :  { %v811_v20 = vpop.f32.mrf.mxu1  ;;  %v715_v23 = vpop.f32.mrf.mxu2 }
 0x195   :  { %v812_v0 = vadd.f32 %v811_v20, %v643_v50  ;;  %v983_v22 = vpack.c.bf16 %v919_v19, %v919_v19  ;;  %1079 = vst.msk [vmem:[%s2339_s3 + $0xf4] sm:$0xf] %vm1017_vm3, %v1014_v21  ;;  %v716_v33 = vadd.f32 %v1495_v9, %v715_v23 }
 0x196   :  { %v637_v25 = vpop.f32.mrf.mxu0 }
 0x197   :  { %v922_v24 = vmax.f32 %v812_v0, 0.0  ;;  %1048 = vst.msk [vmem:[%s2339_s3 + $0x78] sm:$0xf] %vm1017_vm3, %v983_v22  ;;  %v638_v28 = vadd.f32 %v1495_v9, %v637_v25  ;;  %v885_v29 = vadd.f32 %v884_v51, %v716_v33 }
 0x199   :  { %v986_v7 = vpack.c.bf16 %v922_v24, %v922_v24  ;;  %v807_v30 = vadd.f32 %v806_v54, %v638_v28  ;;  %v951_v31 = vmax.f32 %v885_v29, 0.0 }
 0x19b   :  { %1051 = vst.msk [vmem:[%s2339_s3 + $0x84] sm:$0xf] %vm1017_vm3, %v986_v7  ;;  %v920_v32 = vmax.f32 %v807_v30, 0.0  ;;  %v1015_v36 = vpack.c.bf16 %v951_v31, %v951_v31 }
 0x19c   :  { %v717_v35 = vpop.f32.mrf.mxu2 }
 0x19d   :  { %v984_v55 = vpack.c.bf16 %v920_v32, %v920_v32  ;;  %1080 = vst.msk [vmem:[%s2339_s3 + $0xf8] sm:$0xf] %vm1017_vm3, %v1015_v36  ;;  %v718_v37 = vadd.f32 %v1495_v9, %v717_v35 }
 0x19f   :  { %1049 = vst.msk [vmem:[%s2339_s3 + $0x7c] sm:$0xf] %vm1017_vm3, %v984_v55  ;;  %v887_v40 = vadd.f32 %v886_v38, %v718_v37 }
 0x1a1   :  { %v952_v34 = vmax.f32 %v887_v40, 0.0 }
 0x1a3   :  { %v1016_v41 = vpack.c.bf16 %v952_v34, %v952_v34 }
 0x1a5   :  { %1081 = vst.msk [vmem:[%s2339_s3 + $0xfc] sm:$0xf] %vm1017_vm3, %v1016_v41 }

</bundles_post_ra>
